<compile_context>
chip_gen: v7x
topology: tpu7x:2x2x1
jax: 0.10.0
libtpu: 0.0.40
codegen_flags: <defaults>
</compile_context>

<pallas_src>
import math

import jax
import jax.numpy as jnp
from jax.experimental import pallas as pl
from jax.experimental.pallas import tpu as pltpu


def _scale_shift_kernel(x_ref, sm_ref, o_ref):
    # Elementwise fused multiply-add on the VPU.
    # sm_ref row 0 = scale, row 1 = mean; both broadcast over the sublane axis.
    o_ref[...] = x_ref[...] * sm_ref[0:1, :] + sm_ref[1:2, :]


def _round_up(a, b):
    return -(-a // b) * b


def scale_and_shift(x, scale_factors, means, *, tile_rows=1024, max_lanes=1024):
    """y = x * scale_factors + means via a tiled, lane-dense Pallas TPU kernel.

    x:              (..., D) float32
    scale_factors:  (D,)     float32
    means:          (D,)     float32
    """
    x = jnp.asarray(x, jnp.float32)
    scale = jnp.asarray(scale_factors, jnp.float32).reshape(-1)
    mean = jnp.asarray(means, jnp.float32).reshape(-1)

    orig_shape = x.shape
    d = orig_shape[-1]
    assert scale.shape[0] == d and mean.shape[0] == d

    x2 = x.reshape(-1, d)
    n = x2.shape[0]

    if d % 128 == 0:
        # Feature dim already lane-aligned: use it directly as the lane axis.
        lanes, reps = d, 1
        xf = x2
        n_flat = n
    else:
        # Lane-dense repack: group `reps` logical rows into one flat row whose
        # length is a multiple of 128 (and of D), so stores are unmasked.
        l0 = math.lcm(d, 128)
        reps0 = l0 // d
        # Widen up to `max_lanes` but keep at least ~8 sublanes of real rows.
        widen = max(1, min(max_lanes // l0, max(1, n // (8 * reps0))))
        lanes = l0 * widen
        reps = lanes // d
        n_pad = _round_up(n, reps)
        if n_pad != n:
            x2 = jnp.pad(x2, ((0, n_pad - n), (0, 0)))
        xf = x2.reshape(n_pad // reps, lanes)
        n_flat = xf.shape[0]

    # Pack scale & mean into one (2, lanes) operand (single small resident DMA).
    sm = jnp.stack([jnp.tile(scale, reps), jnp.tile(mean, reps)], axis=0)

    # Row tiling: keep each tile <= ~4 MiB so x/out double buffers (~16 MiB
    # total) fit comfortably in scoped VMEM on every chip, while being large
    # enough (>=512 rows at lanes=1024) to sit near the HBM roofline.
    bytes_per_row = lanes * 4
    vmem_rows = max(8, ((4 << 20) // bytes_per_row) // 8 * 8)
    tile_r = min(tile_rows, vmem_rows)

    if n_flat <= tile_r:
        # Small input: one full-extent block (sublane dim == full array dim).
        tile_r = n_flat
        rows_pad = n_flat
    else:
        rows_pad = _round_up(n_flat, tile_r)
        if rows_pad != n_flat:
            xf = jnp.pad(xf, ((0, rows_pad - n_flat), (0, 0)))

    grid = (rows_pad // tile_r,)

    out = pl.pallas_call(
        _scale_shift_kernel,
        out_shape=jax.ShapeDtypeStruct((rows_pad, lanes), jnp.float32),
        grid=grid,
        in_specs=[
            pl.BlockSpec((tile_r, lanes), lambda i: (i, 0)),
            pl.BlockSpec((2, lanes), lambda i: (0, 0)),
        ],
        out_specs=pl.BlockSpec((tile_r, lanes), lambda i: (i, 0)),
        compiler_params=pltpu.CompilerParams(
            # Independent row tiles: shard across TensorCores on v7x.
            dimension_semantics=("parallel",),
        ),
    )(xf, sm)

    # Undo padding / lane-dense repack.
    out = out[:n_flat]
    if reps != 1:
        out = out.reshape(n_flat * reps, d)[:n]
    return out.reshape(orig_shape)


if __name__ == "__main__":
    key = jax.random.PRNGKey(0)
    k_x, k_s, k_m, k_b1, k_b2 = jax.random.split(key, 5)

    # Small PINN-like shape: 8 collocation points, 4 inputs (x, y, z, t).
    N, D = 8, 4
    x = jax.random.normal(k_x, (N, D), dtype=jnp.float32)
    scale_factors = jax.random.uniform(k_s, (D,), dtype=jnp.float32,
                                       minval=0.5, maxval=2.0)
    means = jax.random.normal(k_m, (D,), dtype=jnp.float32)

    y = jax.block_until_ready(scale_and_shift(x, scale_factors, means))
    y_ref = x * scale_factors + means
    assert jnp.allclose(y, y_ref, atol=1e-6), "mismatch (small PINN shape)"

    # Exercise the lane-dense repack path with row padding (D=4, non-multiple).
    x2 = jax.random.normal(k_b1, (3000, D), dtype=jnp.float32)
    y2 = jax.block_until_ready(scale_and_shift(x2, scale_factors, means))
    assert jnp.allclose(y2, x2 * scale_factors + means, atol=1e-6), \
        "mismatch (lane-dense path)"

    # Exercise the multi-step tiled pipeline path (D already a multiple of 128).
    D3 = 256
    x3 = jax.random.normal(k_b2, (4096, D3), dtype=jnp.float32)
    s3 = jnp.linspace(0.5, 2.0, D3, dtype=jnp.float32)
    m3 = jnp.linspace(-1.0, 1.0, D3, dtype=jnp.float32)
    y3 = jax.block_until_ready(scale_and_shift(x3, s3, m3))
    assert jnp.allclose(y3, x3 * s3 + m3, atol=1e-6), "mismatch (tiled path)"

    print("KERNEL_OK")
</pallas_src>

<mosaic_0001>
module attributes {stable_mosaic.version = 11 : i64} {
  func.func @_scale_shift_kernel(%arg0: i32, %arg1: memref<1x128xf32, #tpu.memory_space<vmem>>, %arg2: memref<2x128xf32, #tpu.memory_space<vmem>>, %arg3: memref<1x128xf32, #tpu.memory_space<vmem>>) attributes {dimension_semantics = [#tpu.dimension_semantics<parallel>], iteration_bounds = array<i64: 1>, scalar_prefetch = 0 : i64, scratch_operands = 0 : i64, tpu.core_type = #tpu.core_type<tc>, window_params = [{transform_indices = @transform_0, window_bounds = array<i64: 1, 128>}, {pipeline_mode = #tpu.pipeline_mode<synchronous>, transform_indices = @transform_1, window_bounds = array<i64: 2, 128>}, {transform_indices = @transform_2, window_bounds = array<i64: 1, 128>}]} {
    %c0 = arith.constant 0 : index
    %c0_0 = arith.constant 0 : index
    %0 = vector.load %arg1[%c0, %c0_0] : memref<1x128xf32, #tpu.memory_space<vmem>>, vector<1x128xf32>
    %c0_1 = arith.constant 0 : index
    %c0_2 = arith.constant 0 : index
    %1 = vector.load %arg2[%c0_1, %c0_2] : memref<2x128xf32, #tpu.memory_space<vmem>>, vector<1x128xf32>
    %2 = arith.mulf %0, %1 : vector<1x128xf32>
    %c1 = arith.constant 1 : index
    %c0_3 = arith.constant 0 : index
    %3 = vector.load %arg2[%c1, %c0_3] : memref<2x128xf32, #tpu.memory_space<vmem>>, vector<1x128xf32>
    %4 = arith.addf %2, %3 : vector<1x128xf32>
    %c0_4 = arith.constant 0 : index
    %c0_5 = arith.constant 0 : index
    %5 = vector.load %arg3[%c0_4, %c0_5] : memref<1x128xf32, #tpu.memory_space<vmem>>, vector<1x128xf32>
    tpu.vector_store %arg3[%c0_4, %c0_5], %4 {strides = array<i32>} : memref<1x128xf32, #tpu.memory_space<vmem>>, vector<1x128xf32>,
    return
  }
  func.func @transform_0(%arg0: i32) -> (i32, i32) {
    %c0_i32 = arith.constant 0 : i32
    %c0_i32_0 = arith.constant 0 : i32
    return %arg0, %c0_i32 : i32, i32
  }
  func.func @transform_1(%arg0: i32) -> (i32, i32) {
    %c0_i32 = arith.constant 0 : i32
    %c0_i32_0 = arith.constant 0 : i32
    %c0_i32_1 = arith.constant 0 : i32
    return %c0_i32, %c0_i32_0 : i32, i32
  }
  func.func @transform_2(%arg0: i32) -> (i32, i32) {
    %c0_i32 = arith.constant 0 : i32
    %c0_i32_0 = arith.constant 0 : i32
    return %arg0, %c0_i32 : i32, i32
  }
}

</mosaic_0001>

<bundles_post_ra>
// kernel: tpu_custom_call.1
= control target key start
LH: loop header
LB: loop body
LE: loop exit
PB: predicated region body
PF: predicated region fallthrough
CT: control target
= control target key end

     0   :  { %7 = vsyncpa [#allocation3], 0  ;;  %s142_s0 = inlined_call_operand.hbm [shape: f32[1,128], index: 0, kind: input, shape index: {}]   ;;  %s143_s1 = inlined_call_operand.vmem [shape: f32[2,128], index: 1, kind: input, shape index: {}]   ;;  %s144_s2 = inlined_call_operand.hbm [shape: f32[1,128], index: 2, kind: output, shape index: {}]  }
   0x1   :  { %8 = vsyncpa [#allocation4], 0  ;;  %s95_s9 = smov [#allocation2]   ;;  %s47_s13 = scalar_lea.hbm %s142_s0, 16 }
   0x2   :  { %s15_s10 = sshll.u32 %s95_s9, 4  ;;  %p48_p0 = scmp.ne.s32.totalorder %s142_s0, %s47_s13  ;;  %s16_s10 = int_to_ptr.vmem [resolvable:$true] %s15_s10 }
   0x3   :  { %p51_p1 = scmp.lt.u32.totalorder %s47_s13, %s142_s0 }
   0x5   :  { %p53_p2 = pnand %p51_p1, %p48_p0 }
   0x7   :  { %56 = shalt.err (!%p53_p2)
}
   0x8   :  { %s57_s18 = scalar_lea.vmem %s16_s10, 16  ;;  %s61_s19 = scalar_lea.vmem %s16_s10, 32 }
   0x9   :  { %p58_p3 = scmp.ne.s32.totalorder %s16_s10, %s57_s18  ;;  %p62_p4 = scmp.lt.s32.totalorder %s16_s10, %s16_s10 }
   0xa   :  { %p63_p5 = scmp.lt.s32.totalorder %s61_s19, %s57_s18 }
   0xc   :  { %p64_p6 = por %p63_p5, %p62_p4 }
   0xe   :  { %p65_p7 = pnand %p64_p6, %p58_p3 }
  0x10   :  { %68 = shalt.err (!%p65_p7)
}
  0x11   :  { %18 = dma.hbm_to_vmem [thread:$0]  %s142_s0, 16, %s16_s10, [#allocation3]  }
  0x12   :  { %91 = dma.done.wait [#allocation3], 16  }
  0x13   :  { %92 = vsyncadd [#allocation3], 4294967280  ;;  %s96_s22 = smov [#allocation5]   ;;  %v24_v0 = vld [vmem:[#allocation2] sm:$0x1] }
  0x14   :  { %s36_s23 = sshll.u32 %s96_s22, 4  ;;  %v25_v1 = vld [vmem:[%s143_s1] sm:$0x1]  ;;  %v27_v2 = vld [vmem:[%s143_s1 + $0x1] sm:$0x1]  ;;  %s37_s23 = int_to_ptr.vmem [resolvable:$true] %s36_s23 }
  0x15   :  { %v26_v3 = vmul.f32 %v25_v1, %v24_v0  ;;  %s69_s28 = scalar_lea.vmem %s37_s23, 16  ;;  %s73_s0 = scalar_lea.vmem %s37_s23, 32 }
  0x16   :  { %p70_p8 = scmp.ne.s32.totalorder %s37_s23, %s69_s28  ;;  %p74_p9 = scmp.lt.s32.totalorder %s37_s23, %s37_s23 }
  0x17   :  { %v28_v4 = vadd.f32 %v27_v2, %v26_v3  ;;  %p75_p10 = scmp.lt.s32.totalorder %s73_s0, %s69_s28 }
  0x19   :  { %29 = vst [vmem:[#allocation5] sm:$0x1] %v28_v4  ;;  %p76_p11 = por %p75_p10, %p74_p9 }
  0x1b   :  { %p77_p12 = pnand %p76_p11, %p70_p8 }
  0x1d   :  { %80 = shalt.err (!%p77_p12)
}
  0x1e   :  { %s81_s3 = scalar_lea.hbm %s144_s2, 16 }
  0x1f   :  { %p82_p13 = scmp.ne.s32.totalorder %s144_s2, %s81_s3  ;;  %p85_p0 = scmp.lt.u32.totalorder %s81_s3, %s144_s2 }
  0x21   :  { %p87_p1 = pnand %p85_p0, %p82_p13 }
  0x23   :  { %90 = shalt.err (!%p87_p1)
}
  0x24   :  { %39 = dma.vmem_to_hbm [thread:$0]  %s37_s23, 16, %s144_s2, [#allocation4]  }
  0x25   :  { %93 = dma.done.wait [#allocation4], 16  }
  0x26   :  { %94 = vsyncadd [#allocation4], 4294967280 }
  0x27   :  { %43 = vsyncpa [#allocation3], 1 }
  0x28   :  { %44 = vsyncpa [#allocation4], 1 }

</bundles_post_ra>
